<compile_context>
chip_gen: v7x
topology: tpu7x:2x2x1
jax: 0.10.0
libtpu: 0.0.40
codegen_flags: <defaults>
</compile_context>

<pallas_src>
import jax
import jax.numpy as jnp
from jax.experimental import pallas as pl
from jax.experimental.pallas import tpu as pltpu


def _round_up(x, m):
    return ((x + m - 1) // m) * m


def mlp_kernel(x_ref, w1_ref, b1_ref, w2_ref, b2_ref, o_ref, acc_ref):
    # x_ref:  (TB, TK)    f32        w1_ref: (TK, DH_P)   bf16   b1_ref: (1, DH_P) f32
    # w2_ref: (DH_P, DO_P) bf16      b2_ref: (1, DO_P)    f32    o_ref:  (TB, DO_P) f32
    # acc_ref: (TB, DH_P) f32 VMEM accumulator, persists across the K grid axis.
    k = pl.program_id(1)

    @pl.when(k == 0)
    def _():
        acc_ref[...] = jnp.zeros_like(acc_ref)

    # First linear layer partial product.  Cast the streamed f32 x tile to bf16
    # on the VPU (hidden under DMA/MXU slack) and accumulate in f32 on the MXU.
    acc_ref[...] += jnp.dot(x_ref[...].astype(jnp.bfloat16), w1_ref[...],
                            preferred_element_type=jnp.float32)

    @pl.when(k == pl.num_programs(1) - 1)
    def _():
        # Dropout (eval mode -> identity), bias add + ReLU in f32.
        h = jnp.maximum(acc_ref[...] + b1_ref[...], 0.0)

        # Second linear layer: bf16 into the MXU, f32 accumulation.  b2's lane
        # padding holds -1e30, so padded logits exp() to 0 (no iota mask).
        logits = jnp.dot(h.astype(w2_ref.dtype), w2_ref[...],
                         preferred_element_type=jnp.float32) + b2_ref[...]

        # Numerically stable softmax over dim=1; reciprocal goes to the EUP slot.
        m = jnp.max(logits, axis=-1, keepdims=True)
        e = jnp.exp(logits - m)
        denom = jnp.sum(e, axis=-1, keepdims=True)
        o_ref[...] = e * pl.reciprocal(denom, approx=True)


def _choose_batch_tile(B):
    # bf16 packs two rows per sublane -> tiles are multiples of 16.  Cap at 512
    # rows (mem-bound sweet spot) and keep >= 2 grid steps when the batch
    # allows it so the "parallel" axis shards across both v7x TensorCores.
    if B <= 16:
        return _round_up(B, 16)
    return min(512, _round_up((B + 1) // 2, 16))


def mlp_forward(x_nchw, w1, b1, w2, b2):
    """x_nchw: (B, C, H, W); w1: (dim_in, dim_hidden); b1: (1, dim_hidden);
    w2: (dim_hidden, dim_out); b2: (1, dim_out).  Returns (B, dim_out) f32 softmax."""
    B, C, H, W = x_nchw.shape
    dim_in = C * H * W
    dim_hidden = w1.shape[1]
    dim_out = w2.shape[1]

    # Lane-dense feature padding.  K-split the dim_in reduction once W1 tiles
    # would otherwise get large (keeps resident weights small on v7x's VMEM).
    if dim_in <= 1024:
        DIN_P = _round_up(dim_in, 128)
        TK = DIN_P
    else:
        TK = 512
        DIN_P = _round_up(dim_in, TK)
    DH_P = _round_up(dim_hidden, 128)
    DO_P = _round_up(dim_out, 128)
    TB = _choose_batch_tile(B)
    B_P = _round_up(B, TB)

    # x.view(-1, C*H*W) equivalent (row-major).  Keep the original dtype (the
    # bf16 cast happens inside the kernel); skip padding when already aligned.
    x2 = x_nchw.reshape(B, dim_in)
    if B_P != B or DIN_P != dim_in:
        x2 = jnp.pad(x2, ((0, B_P - B), (0, DIN_P - dim_in)))

    w1p = w1.astype(jnp.bfloat16)
    if DIN_P != dim_in or DH_P != dim_hidden:
        w1p = jnp.pad(w1p, ((0, DIN_P - dim_in), (0, DH_P - dim_hidden)))
    b1p = b1.astype(jnp.float32)
    if DH_P != dim_hidden:
        b1p = jnp.pad(b1p, ((0, 0), (0, DH_P - dim_hidden)))
    w2p = w2.astype(jnp.bfloat16)
    if DH_P != dim_hidden or DO_P != dim_out:
        w2p = jnp.pad(w2p, ((0, DH_P - dim_hidden), (0, DO_P - dim_out)))
    b2p = b2.astype(jnp.float32)
    if DO_P != dim_out:
        # Large negative padding so padded logits vanish in the softmax.
        b2p = jnp.pad(b2p, ((0, 0), (0, DO_P - dim_out)), constant_values=-1e30)

    cost = pl.CostEstimate(
        flops=2 * B_P * (DIN_P * DH_P + DH_P * DO_P),
        transcendentals=B_P * DO_P,
        bytes_accessed=(x2.size * x2.dtype.itemsize
                        + w1p.size * 2 + w2p.size * 2
                        + b1p.size * 4 + b2p.size * 4
                        + B_P * DO_P * 4),
    )

    resident = pl.Buffered(1)  # constant blocks: single-buffer (halve their VMEM)

    out = pl.pallas_call(
        mlp_kernel,
        out_shape=jax.ShapeDtypeStruct((B_P, DO_P), jnp.float32),
        grid_spec=pltpu.PrefetchScalarGridSpec(
            num_scalar_prefetch=0,
            grid=(B_P // TB, DIN_P // TK),
            in_specs=[
                pl.BlockSpec((TB, TK), lambda i, k: (i, k)),           # x tile
                pl.BlockSpec((TK, DH_P), lambda i, k: (k, 0)),         # W1 K-tile
                pl.BlockSpec((1, DH_P), lambda i, k: (0, 0),
                             pipeline_mode=resident),                  # b1 resident
                pl.BlockSpec((DH_P, DO_P), lambda i, k: (0, 0),
                             pipeline_mode=resident),                  # W2 resident
                pl.BlockSpec((1, DO_P), lambda i, k: (0, 0),
                             pipeline_mode=resident),                  # b2 resident
            ],
            out_specs=pl.BlockSpec((TB, DO_P), lambda i, k: (i, 0)),
            scratch_shapes=[pltpu.VMEM((TB, DH_P), jnp.float32)],
        ),
        compiler_params=pltpu.CompilerParams(
            dimension_semantics=("parallel", "arbitrary"),
            vmem_limit_bytes=32 * 1024 * 1024,
        ),
        cost_estimate=cost,
    )(x2, w1p, b1p, w2p, b2p)

    return out[:B, :dim_out]


def mlp_reference(x_nchw, w1, b1, w2, b2):
    """Pure-JAX reference using the same bf16-into-MXU / f32-accumulate recipe."""
    B = x_nchw.shape[0]
    x2 = x_nchw.reshape(B, -1)
    h = jnp.dot(x2.astype(jnp.bfloat16), w1.astype(jnp.bfloat16),
                preferred_element_type=jnp.float32) + b1
    h = jnp.maximum(h, 0.0)
    logits = jnp.dot(h.astype(jnp.bfloat16), w2.astype(jnp.bfloat16),
                     preferred_element_type=jnp.float32) + b2
    return jax.nn.softmax(logits, axis=1)


def init_params(key, dim_in, dim_hidden, dim_out):
    """Deterministic init mimicking nn.Linear's uniform(-1/sqrt(fan_in), 1/sqrt(fan_in))."""
    k1, k2, k3, k4 = jax.random.split(key, 4)
    bound1 = 1.0 / jnp.sqrt(dim_in)
    bound2 = 1.0 / jnp.sqrt(dim_hidden)
    w1 = jax.random.uniform(k1, (dim_in, dim_hidden), jnp.float32, -bound1, bound1)
    b1 = jax.random.uniform(k2, (1, dim_hidden), jnp.float32, -bound1, bound1)
    w2 = jax.random.uniform(k3, (dim_hidden, dim_out), jnp.float32, -bound2, bound2)
    b2 = jax.random.uniform(k4, (1, dim_out), jnp.float32, -bound2, bound2)
    return w1, b1, w2, b2


if __name__ == "__main__":
    key = jax.random.PRNGKey(0)
    kx, kp = jax.random.split(key)

    # Small shapes consistent with the module: batch=2, channels=4, 16x16 spatial.
    B, C, H, W = 2, 4, 16, 16
    dim_in = C * H * W          # 1024
    dim_hidden = 32
    dim_out = 10

    x = jax.random.normal(kx, (B, C, H, W), dtype=jnp.float32)
    w1, b1, w2, b2 = init_params(kp, dim_in, dim_hidden, dim_out)

    out = mlp_forward(x, w1, b1, w2, b2)
    out = jax.block_until_ready(out)

    # Sanity: shape, softmax rows sum to 1, and match against a pure-JAX reference.
    assert out.shape == (B, dim_out)
    row_sums = jnp.sum(out, axis=1)
    assert jnp.allclose(row_sums, jnp.ones_like(row_sums), atol=5e-3)
    ref = mlp_reference(x, w1, b1, w2, b2)
    assert jnp.allclose(out, ref, atol=2e-3, rtol=2e-2)

    print("KERNEL_OK")
</pallas_src>

<mosaic_0001>
module attributes {stable_mosaic.version = 11 : i64} {
  func.func @mlp_kernel(%arg0: i32, %arg1: i32, %arg2: memref<16x1024xf32, #tpu.memory_space<vmem>>, %arg3: memref<1024x128xbf16, #tpu.memory_space<vmem>>, %arg4: memref<1x128xf32, #tpu.memory_space<vmem>>, %arg5: memref<128x128xbf16, #tpu.memory_space<vmem>>, %arg6: memref<1x128xf32, #tpu.memory_space<vmem>>, %arg7: memref<16x128xf32, #tpu.memory_space<vmem>>, %arg8: memref<16x128xf32, #tpu.memory_space<vmem>>) attributes {dimension_semantics = [#tpu.dimension_semantics<parallel>, #tpu.dimension_semantics<arbitrary>], iteration_bounds = array<i64: 1, 1>, scalar_prefetch = 0 : i64, scratch_operands = 1 : i64, tpu.core_type = #tpu.core_type<tc>, window_params = [{transform_indices = @transform_0, window_bounds = array<i64: 16, 1024>}, {transform_indices = @transform_1, window_bounds = array<i64: 1024, 128>}, {pipeline_mode = #tpu.pipeline_mode<synchronous>, transform_indices = @transform_2, window_bounds = array<i64: 1, 128>}, {pipeline_mode = #tpu.pipeline_mode<synchronous>, transform_indices = @transform_3, window_bounds = array<i64: 128, 128>}, {pipeline_mode = #tpu.pipeline_mode<synchronous>, transform_indices = @transform_4, window_bounds = array<i64: 1, 128>}, {transform_indices = @transform_5, window_bounds = array<i64: 16, 128>}]} {
    %c0_i32 = arith.constant 0 : i32
    %0 = arith.cmpi eq, %arg1, %c0_i32 : i32
    %1 = arith.extui %0 : i1 to i32
    %c0_i32_0 = arith.constant 0 : i32
    %2 = arith.cmpi ne, %1, %c0_i32_0 : i32
    scf.if %2 {
      %cst_10 = arith.constant 0.000000e+00 : f32
      %13 = vector.broadcast %cst_10 : f32 to vector<16x128xf32>
      %c0_11 = arith.constant 0 : index
      %c0_12 = arith.constant 0 : index
      %14 = vector.load %arg8[%c0_11, %c0_12] : memref<16x128xf32, #tpu.memory_space<vmem>>, vector<16x128xf32>
      tpu.vector_store %arg8[%c0_11, %c0_12], %13 {strides = array<i32>} : memref<16x128xf32, #tpu.memory_space<vmem>>, vector<16x128xf32>,
    } else {
    }
    %c0 = arith.constant 0 : index
    %c0_1 = arith.constant 0 : index
    %3 = vector.load %arg8[%c0, %c0_1] : memref<16x128xf32, #tpu.memory_space<vmem>>, vector<16x128xf32>
    %c0_2 = arith.constant 0 : index
    %c0_3 = arith.constant 0 : index
    %4 = vector.load %arg2[%c0_2, %c0_3] : memref<16x1024xf32, #tpu.memory_space<vmem>>, vector<16x1024xf32>
    %5 = arith.truncf %4 : vector<16x1024xf32> to vector<16x1024xbf16>
    %c0_4 = arith.constant 0 : index
    %c0_5 = arith.constant 0 : index
    %6 = vector.load %arg3[%c0_4, %c0_5] : memref<1024x128xbf16, #tpu.memory_space<vmem>>, vector<1024x128xbf16>
    %cst = arith.constant dense<0.000000e+00> : vector<16x128xf32>
    %7 = tpu.matmul %5, %6, %cst {dimension_numbers = #tpu.dot_dimension_numbers<[1], [0], [0], [1], [0, 0, 1, 1], [], []>} : vector<16x1024xbf16>, vector<1024x128xbf16>, vector<16x128xf32> -> vector<16x128xf32>
    %8 = arith.addf %3, %7 : vector<16x128xf32>
    %c0_6 = arith.constant 0 : index
    %c0_7 = arith.constant 0 : index
    %9 = vector.load %arg8[%c0_6, %c0_7] : memref<16x128xf32, #tpu.memory_space<vmem>>, vector<16x128xf32>
    tpu.vector_store %arg8[%c0_6, %c0_7], %8 {strides = array<i32>} : memref<16x128xf32, #tpu.memory_space<vmem>>, vector<16x128xf32>,
    %c0_i32_8 = arith.constant 0 : i32
    %10 = arith.cmpi eq, %arg1, %c0_i32_8 : i32
    %11 = arith.extui %10 : i1 to i32
    %c0_i32_9 = arith.constant 0 : i32
    %12 = arith.cmpi ne, %11, %c0_i32_9 : i32
    scf.if %12 {
      %c0_10 = arith.constant 0 : index
      %c0_11 = arith.constant 0 : index
      %13 = vector.load %arg8[%c0_10, %c0_11] : memref<16x128xf32, #tpu.memory_space<vmem>>, vector<16x128xf32>
      %c0_12 = arith.constant 0 : index
      %c0_13 = arith.constant 0 : index
      %14 = vector.load %arg4[%c0_12, %c0_13] : memref<1x128xf32, #tpu.memory_space<vmem>>, vector<1x128xf32>
      %15 = vector.broadcast %14 : vector<1x128xf32> to vector<16x128xf32>
      %16 = arith.addf %13, %15 : vector<16x128xf32>
      %cst_14 = arith.constant 0.000000e+00 : f32
      %17 = vector.broadcast %cst_14 : f32 to vector<16x128xf32>
      %18 = arith.maximumf %16, %17 : vector<16x128xf32>
      %19 = arith.truncf %18 : vector<16x128xf32> to vector<16x128xbf16>
      %c0_15 = arith.constant 0 : index
      %c0_16 = arith.constant 0 : index
      %20 = vector.load %arg5[%c0_15, %c0_16] : memref<128x128xbf16, #tpu.memory_space<vmem>>, vector<128x128xbf16>
      %cst_17 = arith.constant dense<0.000000e+00> : vector<16x128xf32>
      %21 = tpu.matmul %19, %20, %cst_17 {dimension_numbers = #tpu.dot_dimension_numbers<[1], [0], [0], [1], [0, 0, 1, 1], [], []>} : vector<16x128xbf16>, vector<128x128xbf16>, vector<16x128xf32> -> vector<16x128xf32>
      %c0_18 = arith.constant 0 : index
      %c0_19 = arith.constant 0 : index
      %22 = vector.load %arg6[%c0_18, %c0_19] : memref<1x128xf32, #tpu.memory_space<vmem>>, vector<1x128xf32>
      %23 = vector.broadcast %22 : vector<1x128xf32> to vector<16x128xf32>
      %24 = arith.addf %21, %23 : vector<16x128xf32>
      %cst_20 = arith.constant dense<0xFF800000> : vector<16xf32>
      %25 = vector.multi_reduction <maximumf>, %24, %cst_20 [1] : vector<16x128xf32> to vector<16xf32>
      %26 = vector.shape_cast %25 : vector<16xf32> to vector<16x1xf32>
      %27 = vector.broadcast %26 : vector<16x1xf32> to vector<16x128xf32>
      %28 = arith.subf %24, %27 : vector<16x128xf32>
      %29 = math.exp %28 : vector<16x128xf32>
      %cst_21 = arith.constant dense<0.000000e+00> : vector<16xf32>
      %30 = vector.multi_reduction <add>, %29, %cst_21 [1] : vector<16x128xf32> to vector<16xf32>
      %31 = vector.shape_cast %30 : vector<16xf32> to vector<16x1xf32>
      %32 = tpu.reciprocal %31 {approx = true} : vector<16x1xf32> -> vector<16x1xf32>
      %33 = vector.broadcast %32 : vector<16x1xf32> to vector<16x128xf32>
      %34 = arith.mulf %29, %33 : vector<16x128xf32>
      %c0_22 = arith.constant 0 : index
      %c0_23 = arith.constant 0 : index
      %35 = vector.load %arg7[%c0_22, %c0_23] : memref<16x128xf32, #tpu.memory_space<vmem>>, vector<16x128xf32>
      tpu.vector_store %arg7[%c0_22, %c0_23], %34 {strides = array<i32>} : memref<16x128xf32, #tpu.memory_space<vmem>>, vector<16x128xf32>,
    } else {
    }
    return
  }
  func.func @transform_0(%arg0: i32, %arg1: i32) -> (i32, i32) {
    %c0_i32 = arith.constant 0 : i32
    return %arg0, %arg1 : i32, i32
  }
  func.func @transform_1(%arg0: i32, %arg1: i32) -> (i32, i32) {
    %c0_i32 = arith.constant 0 : i32
    %c0_i32_0 = arith.constant 0 : i32
    return %arg1, %c0_i32 : i32, i32
  }
  func.func @transform_2(%arg0: i32, %arg1: i32) -> (i32, i32) {
    %c0_i32 = arith.constant 0 : i32
    %c0_i32_0 = arith.constant 0 : i32
    %c0_i32_1 = arith.constant 0 : i32
    return %c0_i32, %c0_i32_0 : i32, i32
  }
  func.func @transform_3(%arg0: i32, %arg1: i32) -> (i32, i32) {
    %c0_i32 = arith.constant 0 : i32
    %c0_i32_0 = arith.constant 0 : i32
    %c0_i32_1 = arith.constant 0 : i32
    return %c0_i32, %c0_i32_0 : i32, i32
  }
  func.func @transform_4(%arg0: i32, %arg1: i32) -> (i32, i32) {
    %c0_i32 = arith.constant 0 : i32
    %c0_i32_0 = arith.constant 0 : i32
    %c0_i32_1 = arith.constant 0 : i32
    return %c0_i32, %c0_i32_0 : i32, i32
  }
  func.func @transform_5(%arg0: i32, %arg1: i32) -> (i32, i32) {
    %c0_i32 = arith.constant 0 : i32
    %c0_i32_0 = arith.constant 0 : i32
    return %arg0, %c0_i32 : i32, i32
  }
}

</mosaic_0001>

<bundles_post_ra>
// kernel: tpu_custom_call.1
= control target key start
LH: loop header
LB: loop body
LE: loop exit
PB: predicated region body
PF: predicated region fallthrough
CT: control target
= control target key end

     0   :  { %10 = vsyncpa [#allocation4], 0  ;;  %s1420_s0 = inlined_call_operand.hbm [shape: f32[16,1024], index: 0, kind: input, shape index: {}]   ;;  %s1421_s1 = inlined_call_operand.hbm [shape: bf16[1024,128], index: 1, kind: input, shape index: {}]   ;;  %s1422_s2 = inlined_call_operand.vmem [shape: f32[1,128], index: 2, kind: input, shape index: {}]   ;;  %s1423_s3 = inlined_call_operand.hbm [shape: bf16[128,128], index: 3, kind: input, shape index: {}]   ;;  %s1424_s4 = inlined_call_operand.vmem [shape: f32[1,128], index: 4, kind: input, shape index: {}]   ;;  %s1425_s5 = inlined_call_operand.hbm [shape: f32[16,128], index: 5, kind: output, shape index: {}]  }
   0x1   :  { %11 = vsyncpa [#allocation7], 0 }
   0x2   :  { %12 = vsyncpa [#allocation5], 0  ;;  %s1318_s18 = smov [#allocation6]   ;;  %s1224_s22 = scalar_lea.hbm %s1421_s1, 8192 }
   0x3   :  { %s30_s19 = sshll.u32 %s1318_s18, 4  ;;  %p1225_p0 = scmp.ne.s32.totalorder %s1421_s1, %s1224_s22  ;;  %s31_s19 = int_to_ptr.vmem [resolvable:$true] %s30_s19 }
   0x4   :  { %p1228_p1 = scmp.lt.u32.totalorder %s1224_s22, %s1421_s1 }
   0x6   :  { %p1230_p2 = pnand %p1228_p1, %p1225_p0 }
   0x8   :  { %1233 = shalt.err (!%p1230_p2)
}
   0x9   :  { %s1234_s27 = scalar_lea.vmem %s31_s19, 8192  ;;  %p1239_p4 = scmp.lt.s32.totalorder %s31_s19, %s31_s19 }
   0xa   :  { %p1235_p3 = scmp.ne.s32.totalorder %s31_s19, %s1234_s27  ;;  %p1240_p5 = scmp.lt.s32.totalorder %s1234_s27, %s1234_s27 }
   0xc   :  { %p1241_p6 = por %p1240_p5, %p1239_p4 }
   0xe   :  { %p1242_p7 = pnand %p1241_p6, %p1235_p3 }
  0x10   :  { %1245 = shalt.err (!%p1242_p7)
}
  0x11   :  { %s1319_s28 = smov 64   ;;  %s1320_s29 = smov 4  }
  0x12   :  { %36 = dma.hbm_to_vmem [thread:$0]  %s1421_s1, 8192, %s31_s19, [#allocation7], %s1319_s28, %s1319_s28, %s1320_s29  }
  0x13   :  { %s1321_s7 = smov [#allocation3]   ;;  %s1246_s11 = scalar_lea.hbm %s1420_s0, 2048 }
  0x14   :  { %s18_s8 = sshll.u32 %s1321_s7, 4  ;;  %p1247_p8 = scmp.ne.s32.totalorder %s1420_s0, %s1246_s11  ;;  %s19_s8 = int_to_ptr.vmem [resolvable:$true] %s18_s8 }
  0x15   :  { %p1250_p9 = scmp.lt.u32.totalorder %s1246_s11, %s1420_s0 }
  0x17   :  { %p1252_p10 = pnand %p1250_p9, %p1247_p8 }
  0x19   :  { %1255 = shalt.err (!%p1252_p10)
}
  0x1a   :  { %s1256_s16 = scalar_lea.vmem %s19_s8, 2048  ;;  %p1261_p12 = scmp.lt.s32.totalorder %s19_s8, %s19_s8 }
  0x1b   :  { %p1257_p11 = scmp.ne.s32.totalorder %s19_s8, %s1256_s16  ;;  %p1262_p13 = scmp.lt.s32.totalorder %s1256_s16, %s1256_s16 }
  0x1d   :  { %p1263_p0 = por %p1262_p13, %p1261_p12 }
  0x1f   :  { %p1264_p1 = pnand %p1263_p0, %p1257_p11 }
  0x21   :  { %1267 = shalt.err (!%p1264_p1)
}
  0x22   :  { %s1322_s1 = smov 1024   ;;  %s1323_s19 = smov [#allocation8]  }
  0x23   :  { %24 = dma.hbm_to_vmem [thread:$0]  %s1420_s0, 2048, %s19_s8, [#allocation4], %s1322_s1, %s1322_s1, %s1319_s28  }
  0x24   :  { %s44_s20 = sshll.u32 %s1323_s19, 4  ;;  %s1268_s23 = scalar_lea.hbm %s1423_s3, 1024  ;;  %s45_s20 = int_to_ptr.vmem [resolvable:$true] %s44_s20 }
  0x25   :  { %p1269_p2 = scmp.ne.s32.totalorder %s1423_s3, %s1268_s23  ;;  %p1272_p3 = scmp.lt.u32.totalorder %s1268_s23, %s1423_s3 }
  0x27   :  { %p1274_p4 = pnand %p1272_p3, %p1269_p2 }
  0x29   :  { %1277 = shalt.err (!%p1274_p4)
}
  0x2a   :  { %s1278_s30 = scalar_lea.vmem %s45_s20, 1024  ;;  %p1283_p6 = scmp.lt.s32.totalorder %s45_s20, %s45_s20 }
  0x2b   :  { %p1279_p5 = scmp.ne.s32.totalorder %s45_s20, %s1278_s30  ;;  %p1284_p7 = scmp.lt.s32.totalorder %s1278_s30, %s1278_s30 }
  0x2d   :  { %p1285_p8 = por %p1284_p7, %p1283_p6 }
  0x2f   :  { %p1286_p9 = pnand %p1285_p8, %p1279_p5 }
  0x31   :  { %1289 = shalt.err (!%p1286_p9)
}
  0x32   :  { %50 = dma.hbm_to_vmem [thread:$0]  %s1423_s3, 1024, %s45_s20, [#allocation7], %s1319_s28, %s1319_s28, %s1320_s29  }
  0x33   :  { %1312 = dma.done.wait [#allocation4], 2048  }
  0x34   :  { %1313 = vsyncadd [#allocation4], 4294965248 }
  0x35   :  { %1314 = dma.done.wait [#allocation7], 9216  }
  0x36   :  { %1315 = vsyncadd [#allocation7], 4294958080  ;;  %v1144_v0 = vld [vmem:[#allocation6 + $0x40] sm:$0xff]   ;;  %v1148_v4 = vld [vmem:[#allocation6 + $0x48] sm:$0xff]   ;;  %vm1325_vm0 = vmmov 0  }
  0x37   :  { %v1145_v1 = vld [vmem:[#allocation6 + $0xc0] sm:$0xff]   ;;  %1016 = vmatprep.subr.bf16.mxu0 %v1144_v0  ;;  %v1149_v5 = vld [vmem:[#allocation6 + $0xc8] sm:$0xff]   ;;  %v1152_v8 = vld [vmem:[#allocation6 + $0x50] sm:$0xff]  }
  0x38   :  { %v1146_v2 = vld [vmem:[#allocation6] sm:$0xff]   ;;  %1038 = vmatprep.subr.bf16.mxu1 %v1145_v1  ;;  %v1150_v6 = vld [vmem:[#allocation6 + $0x8] sm:$0xff]   ;;  %v1153_v9 = vld [vmem:[#allocation6 + $0xd0] sm:$0xff]  }
  0x39   :  { %v1147_v3 = vld [vmem:[#allocation6 + $0x80] sm:$0xff]   ;;  %1017 = vmatpush3.bf16.msra.mxu0 %v1146_v2  ;;  %v1151_v7 = vld [vmem:[#allocation6 + $0x88] sm:$0xff]   ;;  %v1154_v10 = vld [vmem:[#allocation6 + $0x10] sm:$0xff]  }
  0x3a   :  { %1039 = vmatpush3.bf16.msra.mxu1 %v1147_v3  ;;  %1018 = vmatprep.subr.bf16.mxu0 %v1148_v4  ;;  %v1155_v11 = vld [vmem:[#allocation6 + $0x90] sm:$0xff]   ;;  %v1156_v12 = vld [vmem:[#allocation6 + $0x58] sm:$0xff]   ;;  %v1160_v16 = vld [vmem:[#allocation6 + $0x60] sm:$0xff]  }
  0x3b   :  { %1040 = vmatprep.subr.bf16.mxu1 %v1149_v5  ;;  %v1157_v13 = vld [vmem:[#allocation6 + $0xd8] sm:$0xff]   ;;  %v1161_v17 = vld [vmem:[#allocation6 + $0xe0] sm:$0xff]   ;;  %v1164_v20 = vld [vmem:[#allocation6 + $0x68] sm:$0xff]  }
  0x3c   :  { %v1158_v14 = vld [vmem:[#allocation6 + $0x18] sm:$0xff]   ;;  %v1162_v18 = vld [vmem:[#allocation6 + $0x20] sm:$0xff]   ;;  %v1165_v21 = vld [vmem:[#allocation6 + $0xe8] sm:$0xff]  }
  0x3d   :  { %1019 = vmatpush3.bf16.msra.mxu0 %v1150_v6  ;;  %v1159_v15 = vld [vmem:[#allocation6 + $0x98] sm:$0xff]   ;;  %v1163_v19 = vld [vmem:[#allocation6 + $0xa0] sm:$0xff]   ;;  %v1166_v22 = vld [vmem:[#allocation6 + $0x28] sm:$0xff]  }
  0x3e   :  { %1041 = vmatpush3.bf16.msra.mxu1 %v1151_v7  ;;  %1020 = vmatprep.subr.bf16.mxu0 %v1152_v8  ;;  %v1167_v23 = vld [vmem:[#allocation6 + $0xa8] sm:$0xff]   ;;  %v1168_v24 = vld [vmem:[#allocation6 + $0x70] sm:$0xff]   ;;  %v1172_v28 = vld [vmem:[#allocation6 + $0x78] sm:$0xff]  }
  0x3f   :  { %1042 = vmatprep.subr.bf16.mxu1 %v1153_v9  ;;  %v1169_v25 = vld [vmem:[#allocation6 + $0xf0] sm:$0xff]   ;;  %v1173_v29 = vld [vmem:[#allocation6 + $0xf8] sm:$0xff]   ;;  %v72_v32 = vld [vmem:[#allocation3 + $0x8] sm:$0xff] }
  0x40   :  { %v1170_v26 = vld [vmem:[#allocation6 + $0x30] sm:$0xff]   ;;  %v1174_v30 = vld [vmem:[#allocation6 + $0x38] sm:$0xff]   ;;  %v80_v33 = vld [vmem:[#allocation3 + $0x48] sm:$0xff] }
  0x41   :  { %1021 = vmatpush3.bf16.msra.mxu0 %v1154_v10  ;;  %v1171_v27 = vld [vmem:[#allocation6 + $0xb0] sm:$0xff]   ;;  %v1175_v31 = vld [vmem:[#allocation6 + $0xb8] sm:$0xff]   ;;  %v88_v35 = vpack.c.bf16 %v80_v33, %v72_v32  ;;  %v71_v37 = vld [vmem:[#allocation3] sm:$0xff] }
  0x42   :  { %1043 = vmatpush3.bf16.msra.mxu1 %v1155_v11  ;;  %1022 = vmatprep.subr.bf16.mxu0 %v1156_v12  ;;  %v74_v34 = vld [vmem:[#allocation3 + $0x18] sm:$0xff]  ;;  %v79_v38 = vld [vmem:[#allocation3 + $0x40] sm:$0xff]  ;;  %v73_v41 = vld [vmem:[#allocation3 + $0x10] sm:$0xff] }
  0x43   :  { %1044 = vmatprep.subr.bf16.mxu1 %v1157_v13  ;;  %v82_v36 = vld [vmem:[#allocation3 + $0x58] sm:$0xff]  ;;  %v87_v40 = vpack.c.bf16 %v79_v38, %v71_v37  ;;  %v81_v42 = vld [vmem:[#allocation3 + $0x50] sm:$0xff]  ;;  %639 = vmatprep.mubr.bf16.mxu0 %v88_v35  ;;  %v1176_v44 = vld [vmem:[#allocation6 + $0x140] sm:$0xff]  }
  0x44   :  { %v90_v39 = vpack.c.bf16 %v82_v36, %v74_v34  ;;  %v89_v43 = vpack.c.bf16 %v81_v42, %v73_v41  ;;  %v1177_v45 = vld [vmem:[#allocation6 + $0x1c0] sm:$0xff]   ;;  %v1180_v48 = vld [vmem:[#allocation6 + $0x148] sm:$0xff]   ;;  %v1184_v52 = vld [vmem:[#allocation6 + $0x150] sm:$0xff]  }
  0x45   :  { %1023 = vmatpush3.bf16.msra.mxu0 %v1158_v14  ;;  %v1178_v46 = vld [vmem:[#allocation6 + $0x100] sm:$0xff]   ;;  %v1181_v49 = vld [vmem:[#allocation6 + $0x1c8] sm:$0xff]   ;;  %v1185_v53 = vld [vmem:[#allocation6 + $0x1d0] sm:$0xff]  }
  0x46   :  { %1045 = vmatpush3.bf16.msra.mxu1 %v1159_v15  ;;  %1024 = vmatprep.subr.bf16.mxu0 %v1160_v16  ;;  %v1179_v47 = vld [vmem:[#allocation6 + $0x180] sm:$0xff]   ;;  %v1182_v50 = vld [vmem:[#allocation6 + $0x108] sm:$0xff]   ;;  %v1186_v54 = vld [vmem:[#allocation6 + $0x110] sm:$0xff]  }
  0x47   :  { %1046 = vmatprep.subr.bf16.mxu1 %v1161_v17  ;;  %680 = vmatprep.mubr.bf16.mxu1 %v90_v39  ;;  %v1183_v51 = vld [vmem:[#allocation6 + $0x188] sm:$0xff]   ;;  %v1187_v55 = vld [vmem:[#allocation6 + $0x190] sm:$0xff]   ;;  %v1188_v56 = vld [vmem:[#allocation6 + $0x158] sm:$0xff]  }
  0x48   :  { %v1189_v57 = vld [vmem:[#allocation6 + $0x1d8] sm:$0xff]   ;;  %v1192_v60 = vld [vmem:[#allocation6 + $0x160] sm:$0xff]   ;;  %v1196_v0 = vld [vmem:[#allocation6 + $0x168] sm:$0xff]  }
  0x49   :  { %1025 = vmatpush3.bf16.msra.mxu0 %v1162_v18  ;;  %v1190_v58 = vld [vmem:[#allocation6 + $0x118] sm:$0xff]   ;;  %v1193_v61 = vld [vmem:[#allocation6 + $0x1e0] sm:$0xff]   ;;  %v1197_v1 = vld [vmem:[#allocation6 + $0x1e8] sm:$0xff]  }
  0x4a   :  { %1047 = vmatpush3.bf16.msra.mxu1 %v1163_v19  ;;  %1026 = vmatprep.subr.bf16.mxu0 %v1164_v20  ;;  %v1191_v59 = vld [vmem:[#allocation6 + $0x198] sm:$0xff]   ;;  %v1194_v62 = vld [vmem:[#allocation6 + $0x120] sm:$0xff]   ;;  %v1198_v2 = vld [vmem:[#allocation6 + $0x128] sm:$0xff]  }
  0x4b   :  { %1048 = vmatprep.subr.bf16.mxu1 %v1165_v21  ;;  %v1195_v63 = vld [vmem:[#allocation6 + $0x1a0] sm:$0xff]   ;;  %v1199_v3 = vld [vmem:[#allocation6 + $0x1a8] sm:$0xff]   ;;  %v1200_v4 = vld [vmem:[#allocation6 + $0x170] sm:$0xff]  }
  0x4c   :  { %v1201_v5 = vld [vmem:[#allocation6 + $0x1f0] sm:$0xff]   ;;  %v1204_v8 = vld [vmem:[#allocation6 + $0x178] sm:$0xff]   ;;  %v76_v12 = vld [vmem:[#allocation3 + $0x28] sm:$0xff] }
  0x4d   :  { %1027 = vmatpush3.bf16.msra.mxu0 %v1166_v22  ;;  %v1202_v6 = vld [vmem:[#allocation6 + $0x130] sm:$0xff]   ;;  %v1205_v9 = vld [vmem:[#allocation6 + $0x1f8] sm:$0xff]   ;;  %v84_v13 = vld [vmem:[#allocation3 + $0x68] sm:$0xff] }
  0x4e   :  { %1049 = vmatpush3.bf16.msra.mxu1 %v1167_v23  ;;  %1028 = vmatprep.subr.bf16.mxu0 %v1168_v24  ;;  %v1203_v7 = vld [vmem:[#allocation6 + $0x1b0] sm:$0xff]   ;;  %v1206_v10 = vld [vmem:[#allocation6 + $0x138] sm:$0xff]   ;;  %v92_v16 = vpack.c.bf16 %v84_v13, %v76_v12  ;;  %v75_v18 = vld [vmem:[#allocation3 + $0x20] sm:$0xff] }
  0x4f   :  { %1050 = vmatprep.subr.bf16.mxu1 %v1169_v25  ;;  %v1207_v11 = vld [vmem:[#allocation6 + $0x1b8] sm:$0xff]   ;;  %v83_v19 = vld [vmem:[#allocation3 + $0x60] sm:$0xff]  ;;  %v77_v20 = vld [vmem:[#allocation3 + $0x30] sm:$0xff]  ;;  %v1324_v25 = vmov 0.0  }
  0x50   :  { %v78_v14 = vld [vmem:[#allocation3 + $0x38] sm:$0xff]  ;;  %v91_v21 = vpack.c.bf16 %v83_v19, %v75_v18  ;;  %v85_v22 = vld [vmem:[#allocation3 + $0x70] sm:$0xff]  ;;  %v1208_v24 = vld [vmem:[#allocation8] sm:$0xff]  }
  0x51   :  { %1029 = vmatpush3.bf16.msra.mxu0 %v1170_v26  ;;  %v86_v15 = vld [vmem:[#allocation3 + $0x78] sm:$0xff]  ;;  %v93_v23 = vpack.c.bf16 %v85_v22, %v77_v20  ;;  %v1209_v26 = vld [vmem:[#allocation8 + $0x8] sm:$0xff]  }
  0x52   :  { %1051 = vmatpush3.bf16.msra.mxu1 %v1171_v27  ;;  %1030 = vmatprep.subr.bf16.mxu0 %v1172_v28  ;;  %v94_v17 = vpack.c.bf16 %v86_v15, %v78_v14  ;;  %v1210_v27 = vld [vmem:[#allocation8 + $0x10] sm:$0xff]   ;;  %v1211_v28 = vld [vmem:[#allocation8 + $0x18] sm:$0xff]  }
  0x53   :  { %1052 = vmatprep.subr.bf16.mxu1 %v1173_v29  ;;  %v1212_v29 = vld [vmem:[#allocation8 + $0x20] sm:$0xff]   ;;  %v1215_v32 = vld [vmem:[#allocation8 + $0x38] sm:$0xff]  }
  0x55   :  { %1031 = vmatpush3.bf16.msra.mxu0 %v1174_v30  ;;  %v1213_v30 = vld [vmem:[#allocation8 + $0x28] sm:$0xff]  }
  0x56   :  { %1053 = vmatpush3.bf16.msra.mxu1 %v1175_v31  ;;  %1060 = vmatprep.subr.bf16.mxu0 %v1176_v44  ;;  %v1214_v31 = vld [vmem:[#allocation8 + $0x30] sm:$0xff]  }
  0x57   :  { %1082 = vmatprep.subr.bf16.mxu1 %v1177_v45 }
  0x58   :  { %640 = vmatmul.mubr.bf16.vlgmr.msra.gmra.mrb[0].mxu0 %v87_v40 }
  0x59   :  { %681 = vmatmul.mubr.bf16.vlgmr.msra.gmra.mrb[0].mxu1 %v89_v43  ;;  %1061 = vmatpush3.bf16.msra.mxu0 %v1178_v46 }
  0x5a   :  { %1083 = vmatpush3.bf16.msra.mxu1 %v1179_v47  ;;  %1062 = vmatprep.subr.bf16.mxu0 %v1180_v48 }
  0x5b   :  { %1084 = vmatprep.subr.bf16.mxu1 %v1181_v49  ;;  %721 = vmatprep.mubr.bf16.mxu0 %v92_v16 }
  0x5c   :  { %762 = vmatprep.mubr.bf16.mxu1 %v94_v17 }
  0x5d   :  { %1063 = vmatpush3.bf16.msra.mxu0 %v1182_v50 }
  0x5e   :  { %1085 = vmatpush3.bf16.msra.mxu1 %v1183_v51  ;;  %1064 = vmatprep.subr.bf16.mxu0 %v1184_v52 }
  0x5f   :  { %1086 = vmatprep.subr.bf16.mxu1 %v1185_v53 }
  0x61   :  { %1065 = vmatpush3.bf16.msra.mxu0 %v1186_v54 }
  0x62   :  { %1087 = vmatpush3.bf16.msra.mxu1 %v1187_v55  ;;  %1066 = vmatprep.subr.bf16.mxu0 %v1188_v56 }
  0x63   :  { %1088 = vmatprep.subr.bf16.mxu1 %v1189_v57 }
  0x65   :  { %1067 = vmatpush3.bf16.msra.mxu0 %v1190_v58 }
  0x66   :  { %1089 = vmatpush3.bf16.msra.mxu1 %v1191_v59  ;;  %1068 = vmatprep.subr.bf16.mxu0 %v1192_v60  ;;  %v1006_v59 = vld [vmem:[%s1422_s2] ss:$0 sm:$0xff]  ;;  %s1326_s2 = smov [#allocation9]  }
  0x67   :  { %1090 = vmatprep.subr.bf16.mxu1 %v1193_v61 }
  0x69   :  { %1069 = vmatpush3.bf16.msra.mxu0 %v1194_v62 }
  0x6a   :  { %1091 = vmatpush3.bf16.msra.mxu1 %v1195_v63  ;;  %1070 = vmatprep.subr.bf16.mxu0 %v1196_v0 }
  0x6b   :  { %1092 = vmatprep.subr.bf16.mxu1 %v1197_v1 }
  0x6d   :  { %1071 = vmatpush3.bf16.msra.mxu0 %v1198_v2 }
  0x6e   :  { %1093 = vmatpush3.bf16.msra.mxu1 %v1199_v3  ;;  %1072 = vmatprep.subr.bf16.mxu0 %v1200_v4 }
  0x6f   :  { %1094 = vmatprep.subr.bf16.mxu1 %v1201_v5  ;;  %v1007_v5 = vld [vmem:[%s1424_s4] ss:$0 sm:$0xff]  ;;  %s929_s4 = sshll.u32 %s1326_s2, 4  ;;  %s930_s4 = int_to_ptr.vmem [resolvable:$true] %s929_s4 }
  0x70   :  { %s1290_s8 = scalar_lea.vmem %s930_s4, 256  ;;  %p1295_p11 = scmp.lt.s32.totalorder %s930_s4, %s930_s4 }
  0x71   :  { %1073 = vmatpush3.bf16.msra.mxu0 %v1202_v6  ;;  %p1291_p10 = scmp.ne.s32.totalorder %s930_s4, %s1290_s8  ;;  %p1296_p12 = scmp.lt.s32.totalorder %s1290_s8, %s1290_s8 }
  0x72   :  { %1095 = vmatpush3.bf16.msra.mxu1 %v1203_v7  ;;  %1074 = vmatprep.subr.bf16.mxu0 %v1204_v8 }
  0x73   :  { %1096 = vmatprep.subr.bf16.mxu1 %v1205_v9  ;;  %p1297_p13 = por %p1296_p12, %p1295_p11 }
  0x75   :  { %1075 = vmatpush3.bf16.msra.mxu0 %v1206_v10  ;;  %p1298_p0 = pnand %p1297_p13, %p1291_p10 }
  0x76   :  { %1097 = vmatpush3.bf16.msra.mxu1 %v1207_v11  ;;  %1113 = vmatprep.subr.bf16.mxu0 %v1324_v25 }
  0x78   :  { %722 = vmatmul.mubr.bf16.vlgmr.msra.gmra.mrb[4].mxu0 %v91_v21 }
  0x79   :  { %763 = vmatmul.mubr.bf16.vlgmr.msra.gmra.mrb[4].mxu1 %v93_v23  ;;  %1114 = vmatpush3.bf16.msra.mxu0 %v1208_v24 }
  0x7a   :  { %1115 = vmatprep.subr.bf16.mxu0 %v1324_v25  ;;  %1129 = vmatprep.mubr.msk.bf16.mxu0 %vm1325_vm0, %v1324_v25 }
  0x7d   :  { %1116 = vmatpush3.bf16.msra.mxu0 %v1209_v26 }
  0x7e   :  { %1117 = vmatprep.subr.bf16.mxu0 %v1324_v25 }
  0x81   :  { %1118 = vmatpush3.bf16.msra.mxu0 %v1210_v27 }
  0x82   :  { %1119 = vmatprep.subr.bf16.mxu0 %v1324_v25 }
  0x85   :  { %1120 = vmatpush3.bf16.msra.mxu0 %v1211_v28 }
  0x86   :  { %1121 = vmatprep.subr.bf16.mxu0 %v1324_v25 }
  0x89   :  { %1122 = vmatpush3.bf16.msra.mxu0 %v1212_v29 }
  0x8a   :  { %1123 = vmatprep.subr.bf16.mxu0 %v1324_v25 }
  0x8d   :  { %1124 = vmatpush3.bf16.msra.mxu0 %v1213_v30 }
  0x8e   :  { %1125 = vmatprep.subr.bf16.mxu0 %v1324_v25 }
  0x91   :  { %1126 = vmatpush3.bf16.msra.mxu0 %v1214_v31 }
  0x92   :  { %1127 = vmatprep.subr.bf16.mxu0 %v1324_v25 }
  0x95   :  { %1128 = vmatpush3.bf16.msra.mxu0 %v1215_v32 }
 0x12b   :  { %v1032_v33 = vpop.f32.mrb[0].mxu0 }
 0x12c   :  { %v1054_v34 = vpop.f32.mrb[0].mxu1  ;;  %v1033_v35 = vpop.f32.mrb[1].mxu0 }
 0x12d   :  { %v1034_v36 = vadd.f32 %v1033_v35, %v1032_v33  ;;  %v1055_v37 = vpop.f32.mrb[1].mxu1  ;;  %v1035_v38 = vpop.f32.mrb[2].mxu0 }
 0x12e   :  { %v1056_v39 = vadd.f32 %v1055_v37, %v1054_v34  ;;  %v1057_v40 = vpop.f32.mrb[2].mxu1  ;;  %v1036_v41 = vpop.f32.mrb[3].mxu0 }
 0x12f   :  { %v1037_v42 = vadd.f32 %v1036_v41, %v1035_v38  ;;  %v1058_v43 = vpop.f32.mrb[3].mxu1 }
 0x130   :  { %v683_v44 = vadd.f32 %v1056_v39, %v1034_v36  ;;  %v1059_v45 = vadd.f32 %v1058_v43, %v1057_v40 }
 0x132   :  { %v686_v46 = vadd.f32 %v1059_v45, %v1037_v42 }
 0x14b   :  { %v1076_v47 = vpop.f32.mrb[4].mxu0 }
 0x14c   :  { %v1098_v48 = vpop.f32.mrb[4].mxu1  ;;  %v1077_v49 = vpop.f32.mrb[5].mxu0 }
 0x14d   :  { %v1078_v50 = vadd.f32 %v1077_v49, %v1076_v47  ;;  %v1099_v51 = vpop.f32.mrb[5].mxu1  ;;  %v1079_v52 = vpop.f32.mrb[6].mxu0 }
 0x14e   :  { %v1100_v53 = vadd.f32 %v1099_v51, %v1098_v48  ;;  %v1101_v54 = vpop.f32.mrb[6].mxu1  ;;  %v1080_v55 = vpop.f32.mrb[7].mxu0 }
 0x14f   :  { %v724_v56 = vadd.f32 %v1078_v50, %v683_v44  ;;  %v1081_v57 = vadd.f32 %v1080_v55, %v1079_v52  ;;  %v1102_v58 = vpop.f32.mrb[7].mxu1 }
 0x150   :  { %v1103_v60 = vadd.f32 %v1102_v58, %v1101_v54 }
 0x151   :  { %v765_v61 = vadd.f32 %v1100_v53, %v724_v56  ;;  %v727_v62 = vadd.f32 %v1081_v57, %v686_v46 }
 0x153   :  { %v787_v63 = vadd.f32 %v1006_v59, %v765_v61  ;;  %v768_v0 = vadd.f32 %v1103_v60, %v727_v62 }
 0x155   :  { %v788_v1 = vadd.f32 %v1006_v59, %v768_v0  ;;  %v789_v2 = vmax.f32 %v787_v63, 0.0 }
 0x157   :  { %v790_v3 = vmax.f32 %v788_v1, 0.0 }
 0x159   :  { %v791_v4 = vpack.c.bf16 %v790_v3, %v789_v2 }
 0x15b   :  { %1130 = vmatmul.mubr.bf16.vlgmr.msra.gmra.mrb[8].mxu0 %v791_v4 }
 0x22e   :  { %v897_v6 = vpop.f32.mrb[8].mxu0 }
 0x22f   :  { %v898_v7 = vadd.f32 %v1007_v5, %v897_v6  ;;  %v1131_v8 = vpop.f32.mrb[9].mxu0 }
 0x230   :  { %v900_v9 = vpop.f32.mrb[10].mxu0 }
 0x231   :  { %904 = vmax.xlane.f32.xlu0 %v898_v7  ;;  %v1132_v10 = vpop.f32.mrb[11].mxu0  ;;  %v901_v11 = vadd.f32 %v1007_v5, %v900_v9 }
 0x235   :  { %906 = vmax.xlane.f32.xlu0 %v901_v11 }
 0x2be   :  { %v905_v12 = vpop.xlane.xlu0 %904 }
 0x2bf   :  { %v908_v13 = vsub.f32 %v898_v7, %v905_v12 }
 0x2c1   :  { %v910_v14 = vmul.f32 1.442695, %v908_v13 }
 0x2c2   :  { %v907_v15 = vpop.xlane.xlu0 %906 }
 0x2c3   :  { %1216 = vpow2.f32 %v910_v14  ;;  %v909_v16 = vsub.f32 %v901_v11, %v907_v15 }
 0x2c5   :  { %v912_v17 = vmul.f32 1.442695, %v909_v16 }
 0x2c7   :  { %1218 = vpow2.f32 %v912_v17 }
 0x2cd   :  { %v1217_v18 = vpop.eup %1216 }
 0x2ce   :  { %914 = vadd.xlane.f32.xlu1 %v1217_v18 }
 0x2d1   :  { %v1219_v19 = vpop.eup %1218 }
 0x2d2   :  { %916 = vadd.xlane.f32.xlu1 %v1219_v19 }
 0x35b   :  { %v915_v20 = vpop.xlane.xlu1 %914 }
 0x35c   :  { %1220 = vrcp.f32 %v915_v20 }
 0x35f   :  { %v917_v21 = vpop.xlane.xlu1 %916 }
 0x360   :  { %1222 = vrcp.f32 %v917_v21 }
 0x366   :  { %v1221_v22 = vpop.eup %1220 }
 0x367   :  { %v920_v23 = vmul.f32 %v1221_v22, %v1217_v18 }
 0x369   :  { %922 = vst [vmem:[#allocation9] sm:$0xff] %v920_v23 }
 0x36a   :  { %v1223_v24 = vpop.eup %1222 }
 0x36b   :  { %v921_v25 = vmul.f32 %v1223_v24, %v1219_v19 }
 0x36d   :  { %923 = vst [vmem:[#allocation9 + $0x8] sm:$0xff] %v921_v25 }
 0x36e   :  { %1301 = shalt.err (!%p1298_p0)
}
 0x36f   :  { %s1302_s11 = scalar_lea.hbm %s1425_s5, 256 }
 0x370   :  { %p1303_p1 = scmp.ne.s32.totalorder %s1425_s5, %s1302_s11  ;;  %p1306_p2 = scmp.lt.u32.totalorder %s1302_s11, %s1425_s5 }
 0x372   :  { %p1308_p3 = pnand %p1306_p2, %p1303_p1 }
 0x374   :  { %1311 = shalt.err (!%p1308_p3)
}
 0x375   :  { %s1327_s16 = smov 128   ;;  %s1328_s1 = smov 8  }
 0x376   :  { %935 = dma.vmem_to_hbm [thread:$0]  %s930_s4, 256, %s1425_s5, [#allocation5], %s1327_s16, %s1327_s16, %s1328_s1  }
 0x377   :  { %1316 = dma.done.wait [#allocation5], 256  }
 0x378   :  { %1317 = vsyncadd [#allocation5], 4294967040 }
 0x379   :  { %939 = vsyncpa [#allocation4], 1 }
 0x37a   :  { %940 = vsyncpa [#allocation7], 1 }
 0x37b   :  { %941 = vsyncpa [#allocation5], 1 }

</bundles_post_ra>
